<compile_context>
chip_gen: v5e
topology: v5e:2x2
jax: 0.10.0
libtpu: 0.0.40
codegen_flags: <defaults>
</compile_context>

<pallas_src>
import jax
import jax.numpy as jnp
from jax.experimental import pallas as pl
from jax.experimental.pallas import tpu as pltpu


def _grad_loss_kernel(thresh_ref, grad_ref, inner_ref, outer_ref, out_ref):
    # thresh_ref : SMEM (1,) f32 (resident across all grid steps)
    # grad_ref / inner_ref / outer_ref : VMEM (Bt, R, 128) tiles (native dtype)
    # out_ref    : VMEM (Bt, 1) f32 — one loss per map in this block
    g = grad_ref[...].astype(jnp.float32)
    inn = inner_ref[...].astype(jnp.float32)
    out = outer_ref[...].astype(jnp.float32)

    # Two-stage reduce per map: sublane-axis partial sums first (cheap VPU
    # adds, g's vregs feed both products), then one cross-lane (XLU) reduce
    # per sum.  Summation order differs from a flat sum; f32 accumulation
    # keeps the difference at roundoff level.
    inner_part = jnp.sum(g * inn, axis=1)                    # (Bt, 128)
    outer_part = jnp.sum(g * out, axis=1)                    # (Bt, 128)
    inner_sum = jnp.sum(inner_part, axis=1, keepdims=True)   # (Bt, 1)
    outer_sum = jnp.sum(outer_part, axis=1, keepdims=True)   # (Bt, 1)

    # PyTorch: if inner_loss > inner_threshold: inner_loss = inner_threshold
    inner_loss = jnp.minimum(inner_sum, thresh_ref[0])
    out_ref[...] = -inner_loss + outer_sum


def _lane_dense_view(x):
    """(B, ...) -> lane-dense (B, R, 128) with R a multiple of 8.

    Flattens each map, zero-pads to a multiple of 8*128 (zero padding does not
    change either sum), and reshapes so every vreg is fully packed.
    224*224 = 50176 = 392*128 needs no padding.
    """
    b = x.shape[0]
    n = 1
    for d in x.shape[1:]:
        n *= int(d)
    xf = x.reshape(b, n)
    pad = (-n) % (8 * 128)
    if pad:
        xf = jnp.pad(xf, ((0, 0), (0, pad)))
    return xf.reshape(b, (n + pad) // 128, 128)


def grad_loss_batched(grad_b, inner_b, outer_b, inner_threshold, *, block_b=8):
    """Batched GradLoss: inputs (B, H, W) in native dtype -> (B,) f32 losses."""
    assert grad_b.shape == inner_b.shape == outer_b.shape, "shape mismatch"
    B = grad_b.shape[0]

    g = _lane_dense_view(grad_b)
    i = _lane_dense_view(inner_b)
    o = _lane_dense_view(outer_b)
    _, R, C = g.shape

    # Bt maps per grid step.  Multi-step blocks must be 8-row aligned so the
    # (Bt, 1) output block satisfies the (8, 128) tiling rule.
    if B <= block_b:
        Bt = B
    else:
        Bt = max(8, (block_b // 8) * 8)
    Bp = -(-B // Bt) * Bt
    if Bp != B:
        pad = ((0, Bp - B), (0, 0), (0, 0))
        g = jnp.pad(g, pad)
        i = jnp.pad(i, pad)
        o = jnp.pad(o, pad)
    n_steps = Bp // Bt

    thresh = jnp.asarray(inner_threshold, dtype=jnp.float32).reshape(1)

    itemsize = jnp.dtype(g.dtype).itemsize
    cost = pl.CostEstimate(
        flops=4 * Bp * R * C,
        transcendentals=0,
        bytes_accessed=3 * Bp * R * C * itemsize + Bp * 4,
    )

    map_spec = pl.BlockSpec((Bt, R, C), lambda b: (b, 0, 0))
    out = pl.pallas_call(
        _grad_loss_kernel,
        out_shape=jax.ShapeDtypeStruct((Bp, 1), jnp.float32),
        grid=(n_steps,),
        in_specs=[
            pl.BlockSpec(memory_space=pltpu.SMEM),   # threshold, resident
            map_spec,                                 # grad   (Bt maps / step)
            map_spec,                                 # inner
            map_spec,                                 # outer
        ],
        out_specs=pl.BlockSpec((Bt, 1), lambda b: (b, 0)),
        compiler_params=pltpu.CompilerParams(
            dimension_semantics=("parallel",)),       # v7x: shard batch over TCs
        cost_estimate=cost,
    )(thresh, g, i, o)
    return out[:B, 0]


def grad_loss(grad_img, inner, outer, inner_threshold):
    """Single-map GradLoss.forward (module semantics). Returns scalar f32."""
    return grad_loss_batched(grad_img[None], inner[None], outer[None],
                             inner_threshold)[0]


def _reference(grad_img, inner, outer, inner_threshold):
    g = grad_img.astype(jnp.float32)
    i = inner.astype(jnp.float32)
    o = outer.astype(jnp.float32)
    inner_loss = jnp.minimum(jnp.sum(g * i), jnp.float32(inner_threshold))
    return -inner_loss + jnp.sum(g * o)


if __name__ == "__main__":
    inner_threshold = 0.5   # GradLoss.__init__ parameter
    H = W = 224             # forward docstring: height = width = 224
    B = 2

    key = jax.random.PRNGKey(0)
    kg, ki, ko = jax.random.split(key, 3)
    grad_b = jax.random.uniform(kg, (B, H, W), dtype=jnp.float32)
    inner_b = jax.random.uniform(ki, (B, H, W), dtype=jnp.float32)
    outer_b = jax.random.uniform(ko, (B, H, W), dtype=jnp.float32)

    ref_v = jax.vmap(_reference, in_axes=(0, 0, 0, None))

    # f32 batched path (clamp branch is exercised: sum >> threshold).
    losses = jax.block_until_ready(
        grad_loss_batched(grad_b, inner_b, outer_b, inner_threshold))
    refs = ref_v(grad_b, inner_b, outer_b, inner_threshold)
    assert jnp.allclose(losses, refs, rtol=1e-3, atol=5e-2), (losses, refs)

    # Single-map (module forward) path.
    loss0 = jax.block_until_ready(
        grad_loss(grad_b[0], inner_b[0], outer_b[0], inner_threshold))
    assert jnp.allclose(loss0, refs[0], rtol=1e-3, atol=5e-2), (loss0, refs[0])

    # Native bf16 inputs: no wrapper-side astype, f32 accumulation in-kernel.
    gb = grad_b.astype(jnp.bfloat16)
    ib = inner_b.astype(jnp.bfloat16)
    ob = outer_b.astype(jnp.bfloat16)
    losses_bf16 = jax.block_until_ready(
        grad_loss_batched(gb, ib, ob, inner_threshold))
    refs_bf16 = ref_v(gb, ib, ob, inner_threshold)
    assert jnp.allclose(losses_bf16, refs_bf16, rtol=1e-3, atol=1e-1), (
        losses_bf16, refs_bf16)

    # Larger batch: exercises Bt-grouping, batch padding, and grid >= 2.
    B2 = 10
    kg2, ki2, ko2 = jax.random.split(jax.random.PRNGKey(1), 3)
    g2 = jax.random.uniform(kg2, (B2, H, W), dtype=jnp.float32)
    i2 = jax.random.uniform(ki2, (B2, H, W), dtype=jnp.float32)
    o2 = jax.random.uniform(ko2, (B2, H, W), dtype=jnp.float32)
    losses2 = jax.block_until_ready(
        grad_loss_batched(g2, i2, o2, inner_threshold))
    refs2 = ref_v(g2, i2, o2, inner_threshold)
    assert jnp.allclose(losses2, refs2, rtol=1e-3, atol=5e-2), (losses2, refs2)

    # Non-multiple-of-1024 spatial size: padded lane-dense fallback; huge
    # threshold also exercises the un-clamped branch.
    Hs = Ws = 20
    kg3, ki3, ko3 = jax.random.split(jax.random.PRNGKey(2), 3)
    g3 = jax.random.uniform(kg3, (2, Hs, Ws), dtype=jnp.float32)
    i3 = jax.random.uniform(ki3, (2, Hs, Ws), dtype=jnp.float32)
    o3 = jax.random.uniform(ko3, (2, Hs, Ws), dtype=jnp.float32)
    big_thresh = 1e6
    losses3 = jax.block_until_ready(
        grad_loss_batched(g3, i3, o3, big_thresh))
    refs3 = ref_v(g3, i3, o3, big_thresh)
    assert jnp.allclose(losses3, refs3, rtol=1e-4, atol=1e-3), (losses3, refs3)

    print("KERNEL_OK")
</pallas_src>

<mosaic_0001>
module attributes {stable_mosaic.version = 11 : i64} {
  func.func @_grad_loss_kernel(%arg0: i32, %arg1: memref<1xf32, #tpu.memory_space<smem>>, %arg2: memref<2x392x128xf32, #tpu.memory_space<vmem>>, %arg3: memref<2x392x128xf32, #tpu.memory_space<vmem>>, %arg4: memref<2x392x128xf32, #tpu.memory_space<vmem>>, %arg5: memref<2x1xf32, #tpu.memory_space<vmem>>) attributes {dimension_semantics = [#tpu.dimension_semantics<parallel>], iteration_bounds = array<i64: 1>, scalar_prefetch = 0 : i64, scratch_operands = 0 : i64, tpu.core_type = #tpu.core_type<tc>, window_params = [{transform_indices = @transform_0, window_bounds = array<i64: 1>}, {transform_indices = @transform_1, window_bounds = array<i64: 2, 392, 128>}, {transform_indices = @transform_2, window_bounds = array<i64: 2, 392, 128>}, {transform_indices = @transform_3, window_bounds = array<i64: 2, 392, 128>}, {transform_indices = @transform_4, window_bounds = array<i64: 2, 1>}]} {
    %c0 = arith.constant 0 : index
    %c0_0 = arith.constant 0 : index
    %c0_1 = arith.constant 0 : index
    %0 = vector.load %arg2[%c0, %c0_0, %c0_1] : memref<2x392x128xf32, #tpu.memory_space<vmem>>, vector<2x392x128xf32>
    %c0_2 = arith.constant 0 : index
    %c0_3 = arith.constant 0 : index
    %c0_4 = arith.constant 0 : index
    %1 = vector.load %arg3[%c0_2, %c0_3, %c0_4] : memref<2x392x128xf32, #tpu.memory_space<vmem>>, vector<2x392x128xf32>
    %c0_5 = arith.constant 0 : index
    %c0_6 = arith.constant 0 : index
    %c0_7 = arith.constant 0 : index
    %2 = vector.load %arg4[%c0_5, %c0_6, %c0_7] : memref<2x392x128xf32, #tpu.memory_space<vmem>>, vector<2x392x128xf32>
    %3 = arith.mulf %0, %1 : vector<2x392x128xf32>
    %cst = arith.constant dense<0.000000e+00> : vector<2x128xf32>
    %4 = vector.multi_reduction <add>, %3, %cst [1] : vector<2x392x128xf32> to vector<2x128xf32>
    %5 = arith.mulf %0, %2 : vector<2x392x128xf32>
    %cst_8 = arith.constant dense<0.000000e+00> : vector<2x128xf32>
    %6 = vector.multi_reduction <add>, %5, %cst_8 [1] : vector<2x392x128xf32> to vector<2x128xf32>
    %cst_9 = arith.constant dense<0.000000e+00> : vector<2xf32>
    %7 = vector.multi_reduction <add>, %4, %cst_9 [1] : vector<2x128xf32> to vector<2xf32>
    %8 = vector.shape_cast %7 : vector<2xf32> to vector<2x1xf32>
    %cst_10 = arith.constant dense<0.000000e+00> : vector<2xf32>
    %9 = vector.multi_reduction <add>, %6, %cst_10 [1] : vector<2x128xf32> to vector<2xf32>
    %10 = vector.shape_cast %9 : vector<2xf32> to vector<2x1xf32>
    %c0_11 = arith.constant 0 : index
    %11 = memref.load %arg1[%c0_11] : memref<1xf32, #tpu.memory_space<smem>>
    %12 = vector.broadcast %11 : f32 to vector<2x1xf32>
    %13 = arith.minimumf %8, %12 : vector<2x1xf32>
    %cst_12 = arith.constant 0.000000e+00 : f32
    %14 = vector.broadcast %cst_12 : f32 to vector<2x1xf32>
    %15 = arith.subf %14, %13 : vector<2x1xf32>
    %16 = arith.addf %15, %10 : vector<2x1xf32>
    %c0_13 = arith.constant 0 : index
    %c0_14 = arith.constant 0 : index
    %17 = vector.load %arg5[%c0_13, %c0_14] : memref<2x1xf32, #tpu.memory_space<vmem>>, vector<2x1xf32>
    tpu.vector_store %arg5[%c0_13, %c0_14], %16 {strides = array<i32>} : memref<2x1xf32, #tpu.memory_space<vmem>>, vector<2x1xf32>,
    return
  }
  func.func @transform_0(%arg0: i32) -> i32 {
    %c0_i32 = arith.constant 0 : i32
    %c0_i32_0 = arith.constant 0 : i32
    return %c0_i32 : i32
  }
  func.func @transform_1(%arg0: i32) -> (i32, i32, i32) {
    %c0_i32 = arith.constant 0 : i32
    %c0_i32_0 = arith.constant 0 : i32
    %c0_i32_1 = arith.constant 0 : i32
    return %arg0, %c0_i32, %c0_i32_0 : i32, i32, i32
  }
  func.func @transform_2(%arg0: i32) -> (i32, i32, i32) {
    %c0_i32 = arith.constant 0 : i32
    %c0_i32_0 = arith.constant 0 : i32
    %c0_i32_1 = arith.constant 0 : i32
    return %arg0, %c0_i32, %c0_i32_0 : i32, i32, i32
  }
  func.func @transform_3(%arg0: i32) -> (i32, i32, i32) {
    %c0_i32 = arith.constant 0 : i32
    %c0_i32_0 = arith.constant 0 : i32
    %c0_i32_1 = arith.constant 0 : i32
    return %arg0, %c0_i32, %c0_i32_0 : i32, i32, i32
  }
  func.func @transform_4(%arg0: i32) -> (i32, i32) {
    %c0_i32 = arith.constant 0 : i32
    %c0_i32_0 = arith.constant 0 : i32
    return %arg0, %c0_i32 : i32, i32
  }
}

</mosaic_0001>

<bundles_post_ra>
// kernel: tpu_custom_call.1
= control target key start
LH: loop header
LB: loop body
LE: loop exit
PB: predicated region body
PF: predicated region fallthrough
CT: control target
= control target key end

     0   :  { %10 = vsyncpa [#allocation4], 0  ;;  %s1322_s0 = inlined_call_operand.<no memory space> [shape: f32[1], index: 0, kind: input, shape index: {}]   ;;  %s1323_s1 = inlined_call_operand.hbm [shape: f32[2,392,128], index: 1, kind: input, shape index: {}]   ;;  %s1324_s2 = inlined_call_operand.hbm [shape: f32[2,392,128], index: 2, kind: input, shape index: {}]   ;;  %s1325_s3 = inlined_call_operand.hbm [shape: f32[2,392,128], index: 3, kind: input, shape index: {}]   ;;  %s1326_s4 = inlined_call_operand.vmem [shape: f32[2,1], index: 4, kind: output, shape index: {}]  }
   0x1   :  { %11 = vsyncpa [#allocation6], 0  ;;  %s31_s17 = sshll.u32 %s1324_s2, 4  ;;  %s881_s18 = smov [#allocation5]   ;;  %s32_s17 = int_to_ptr.hbm [resolvable:$true] %s31_s17 }
   0x2   :  { %s33_s19 = sshll.u32 %s881_s18, 4  ;;  %s18_s22 = sshll.u32 %s1323_s1, 4  ;;  %s34_s19 = int_to_ptr.vmem [resolvable:$true] %s33_s19  ;;  %s19_s22 = int_to_ptr.hbm [resolvable:$true] %s18_s22 }
   0x3   :  { %s882_s23 = smov 128   ;;  %s883_s24 = smov 8  }
   0x4   :  { %39 = dma.hbm_to_vmem [thread:$0]  %s32_s17, 12544, %s34_s19, [#allocation6], %s882_s23, %s882_s23, %s883_s24  }
   0x5   :  { %s884_s25 = smov [#allocation3]   ;;  %s44_s29 = sshll.u32 %s1325_s3, 4  ;;  %s45_s29 = int_to_ptr.hbm [resolvable:$true] %s44_s29 }
   0x6   :  { %s20_s26 = sshll.u32 %s884_s25, 4  ;;  %s885_s2 = smov [#allocation7]   ;;  %s21_s26 = int_to_ptr.vmem [resolvable:$true] %s20_s26 }
   0x7   :  { %26 = dma.hbm_to_vmem [thread:$0]  %s19_s22, 12544, %s21_s26, [#allocation4], %s882_s23, %s882_s23, %s883_s24  }
   0x8   :  { %s46_s30 = sshll.u32 %s885_s2, 4  ;;  %s47_s30 = int_to_ptr.vmem [resolvable:$true] %s46_s30 }
   0x9   :  { %52 = dma.hbm_to_vmem [thread:$0]  %s45_s29, 12544, %s47_s30, [#allocation6], %s882_s23, %s882_s23, %s883_s24  }
   0xa   :  { %877 = dma.done.wait [#allocation4], 12544  }
   0xb   :  { %878 = vsyncadd [#allocation4], 4294954752 }
   0xc   :  { %879 = dma.done.wait [#allocation6], 25088  }
   0xd   :  { %880 = vsyncadd [#allocation6], 4294942208  ;;  %v920_v0 = vld [vmem:[#allocation3] sm:$0xff]  ;;  %v922_v1 = vld [vmem:[#allocation3 + $0x8] sm:$0xff]  ;;  %vm773_vm0 = vcmask 1041409   ;;  %vm776_vm1 = vcmask 1041408  }
   0xe   :  { %v924_v2 = vld [vmem:[#allocation3 + $0x10] sm:$0xff]  ;;  %v926_v3 = vld [vmem:[#allocation3 + $0x18] sm:$0xff]  ;;  %v165_v6 = vld [vmem:[#allocation5 + $0x10] sm:$0xff]  ;;  %vm792_vm2 = vcmask 1024  }
   0xf   :  { %v163_v4 = vld [vmem:[#allocation5] sm:$0xff]  ;;  %v164_v5 = vld [vmem:[#allocation5 + $0x8] sm:$0xff]  ;;  %v166_v7 = vld [vmem:[#allocation5 + $0x18] sm:$0xff]  ;;  %v361_v10 = vmul.f32 %v165_v6, %v924_v2 }
  0x10   :  { %v359_v8 = vmul.f32 %v163_v4, %v920_v0  ;;  %v360_v9 = vmul.f32 %v164_v5, %v922_v1  ;;  %v931_v11 = vld [vmem:[#allocation3 + $0x20] sm:$0xff]  ;;  %v167_v12 = vld [vmem:[#allocation5 + $0x20] sm:$0xff]  ;;  %v362_v13 = vmul.f32 %v166_v7, %v926_v3  ;;  %v934_v15 = vld [vmem:[#allocation3 + $0x28] sm:$0xff] }
  0x11   :  { %v168_v16 = vld [vmem:[#allocation5 + $0x28] sm:$0xff]  ;;  %v363_v17 = vmul.f32 %v167_v12, %v931_v11  ;;  %v937_v19 = vld [vmem:[#allocation3 + $0x30] sm:$0xff]  ;;  %v169_v20 = vld [vmem:[#allocation5 + $0x30] sm:$0xff] }
  0x12   :  { %v457_v14 = vadd.f32 %v360_v9, %v359_v8  ;;  %v364_v21 = vmul.f32 %v168_v16, %v934_v15  ;;  %v940_v23 = vld [vmem:[#allocation3 + $0x38] sm:$0xff]  ;;  %v170_v24 = vld [vmem:[#allocation5 + $0x38] sm:$0xff]  ;;  %v365_v25 = vmul.f32 %v169_v20, %v937_v19  ;;  %v943_v27 = vld [vmem:[#allocation3 + $0x40] sm:$0xff] }
  0x13   :  { %v171_v28 = vld [vmem:[#allocation5 + $0x40] sm:$0xff]  ;;  %v366_v29 = vmul.f32 %v170_v24, %v940_v23  ;;  %v946_v31 = vld [vmem:[#allocation3 + $0x48] sm:$0xff]  ;;  %v172_v32 = vld [vmem:[#allocation5 + $0x48] sm:$0xff] }
  0x14   :  { %v458_v18 = vadd.f32 %v457_v14, %v361_v10  ;;  %v948_v33 = vld [vmem:[#allocation3 + $0x50] sm:$0xff]  ;;  %v367_v34 = vmul.f32 %v171_v28, %v943_v27  ;;  %v951_v36 = vld [vmem:[#allocation3 + $0x188] sm:$0xff]  ;;  %v173_v38 = vld [vmem:[#allocation5 + $0x50] sm:$0xff]  ;;  %v368_v42 = vmul.f32 %v172_v32, %v946_v31 }
  0x15   :  { %v953_v37 = vld [vmem:[#allocation3 + $0x190] sm:$0xff]  ;;  %v955_v39 = vld [vmem:[#allocation3 + $0x58] sm:$0xff]  ;;  %v174_v41 = vld [vmem:[#allocation5 + $0x58] sm:$0xff]  ;;  %v369_v49 = vmul.f32 %v173_v38, %v948_v33 }
  0x16   :  { %v459_v22 = vadd.f32 %v458_v18, %v362_v13  ;;  %v957_v40 = vld [vmem:[#allocation3 + $0x198] sm:$0xff]  ;;  %v213_v45 = vld [vmem:[#allocation5 + $0x190] sm:$0xff]  ;;  %v214_v46 = vld [vmem:[#allocation5 + $0x198] sm:$0xff]  ;;  %v370_v58 = vmul.f32 %v174_v41, %v955_v39 }
  0x17   :  { %v212_v44 = vld [vmem:[#allocation5 + $0x188] sm:$0xff]  ;;  %v960_v47 = vld [vmem:[#allocation3 + $0x1a0] sm:$0xff]  ;;  %v215_v48 = vld [vmem:[#allocation5 + $0x1a0] sm:$0xff]  ;;  %v409_v51 = vmul.f32 %v213_v45, %v953_v37  ;;  %v410_v55 = vmul.f32 %v214_v46, %v957_v40 }
  0x18   :  { %v460_v26 = vadd.f32 %v459_v22, %v363_v17  ;;  %v408_v50 = vmul.f32 %v212_v44, %v951_v36  ;;  %v965_v53 = vld [vmem:[#allocation3 + $0x60] sm:$0xff]  ;;  %v175_v54 = vld [vmem:[#allocation5 + $0x60] sm:$0xff]  ;;  %v968_v56 = vld [vmem:[#allocation3 + $0x1a8] sm:$0xff]  ;;  %v411_v62 = vmul.f32 %v215_v48, %v960_v47 }
  0x19   :  { %v216_v57 = vld [vmem:[#allocation5 + $0x1a8] sm:$0xff]  ;;  %v971_v60 = vld [vmem:[#allocation3 + $0x68] sm:$0xff]  ;;  %v974_v4 = vld [vmem:[#allocation3 + $0x1b0] sm:$0xff]  ;;  %v371_v6 = vmul.f32 %v175_v54, %v965_v53 }
  0x1a   :  { %v461_v30 = vadd.f32 %v460_v26, %v364_v21  ;;  %v176_v61 = vld [vmem:[#allocation5 + $0x68] sm:$0xff]  ;;  %v511_v63 = vadd.f32 %v409_v51, %v408_v50  ;;  %v217_v5 = vld [vmem:[#allocation5 + $0x1b0] sm:$0xff]  ;;  %v977_v8 = vld [vmem:[#allocation3 + $0x70] sm:$0xff]  ;;  %v412_v10 = vmul.f32 %v216_v57, %v968_v56 }
  0x1b   :  { %v177_v9 = vld [vmem:[#allocation5 + $0x70] sm:$0xff]  ;;  %v980_v13 = vld [vmem:[#allocation3 + $0x1b8] sm:$0xff]  ;;  %v218_v14 = vld [vmem:[#allocation5 + $0x1b8] sm:$0xff]  ;;  %v372_v16 = vmul.f32 %v176_v61, %v971_v60  ;;  %v413_v21 = vmul.f32 %v217_v5, %v974_v4 }
  0x1c   :  { %v462_v35 = vadd.f32 %v461_v30, %v365_v25  ;;  %v512_v12 = vadd.f32 %v511_v63, %v410_v55  ;;  %v983_v18 = vld [vmem:[#allocation3 + $0x78] sm:$0xff]  ;;  %v178_v20 = vld [vmem:[#allocation5 + $0x78] sm:$0xff]  ;;  %v986_v24 = vld [vmem:[#allocation3 + $0x1c0] sm:$0xff]  ;;  %v373_v26 = vmul.f32 %v177_v9, %v977_v8  ;;  %v414_v32 = vmul.f32 %v218_v14, %v980_v13 }
  0x1d   :  { %v219_v25 = vld [vmem:[#allocation5 + $0x1c0] sm:$0xff]  ;;  %v220_v38 = vld [vmem:[#allocation5 + $0x1c8] sm:$0xff]  ;;  %v374_v41 = vmul.f32 %v178_v20, %v983_v18  ;;  %v181_v54 = vld [vmem:[#allocation5 + $0x90] sm:$0xff] }
  0x1e   :  { %v463_v43 = vadd.f32 %v462_v35, %v366_v29  ;;  %v513_v22 = vadd.f32 %v512_v12, %v411_v62  ;;  %v989_v29 = vld [vmem:[#allocation3 + $0x80] sm:$0xff]  ;;  %v179_v30 = vld [vmem:[#allocation5 + $0x80] sm:$0xff]  ;;  %v992_v35 = vld [vmem:[#allocation3 + $0x1c8] sm:$0xff]  ;;  %v415_v45 = vmul.f32 %v219_v25, %v986_v24 }
  0x1f   :  { %1348 = vst [vmem:[#allocation10_spill] sm:$0xff] %v989_v29  ;;  %v180_v44 = vld [vmem:[#allocation5 + $0x88] sm:$0xff]  ;;  %v998_v48 = vld [vmem:[#allocation3 + $0x1d0] sm:$0xff]  ;;  %v375_v50 = vmul.f32 %v179_v30, %v989_v29  ;;  %v416_v55 = vmul.f32 %v220_v38, %v992_v35  ;;  %v182_v5 = vld [vmem:[#allocation5 + $0x98] sm:$0xff] }
  0x20   :  { %v464_v52 = vadd.f32 %v463_v43, %v367_v34  ;;  %v514_v34 = vadd.f32 %v513_v22, %v412_v10  ;;  %v995_v43 = vld [vmem:[#allocation3 + $0x88] sm:$0xff]  ;;  %v1007_v63 = vld [vmem:[#allocation3 + $0x98] sm:$0xff]  ;;  %v1010_v9 = vld [vmem:[#allocation3 + $0xa0] sm:$0xff] }
  0x21   :  { %1349 = vst [vmem:[#allocation11_spill] sm:$0xff] %v995_v43  ;;  %v376_v61 = vmul.f32 %v180_v44, %v995_v43  ;;  %v1012_v10 = vld [vmem:[#allocation3 + $0x1e0] sm:$0xff]  ;;  %v223_v12 = vld [vmem:[#allocation5 + $0x1e0] sm:$0xff]  ;;  %v262_v25 = vld [vmem:[#allocation7 + $0x8] sm:$0xff]  ;;  %v378_v30 = vmul.f32 %v182_v5, %v1007_v63 }
  0x22   :  { %v465_v59 = vadd.f32 %v464_v52, %v368_v42  ;;  %v515_v46 = vadd.f32 %v514_v34, %v413_v21  ;;  %v1001_v52 = vld [vmem:[#allocation3 + $0x90] sm:$0xff]  ;;  %1351 = vst [vmem:[#allocation13_spill] sm:$0xff] %v1007_v63  ;;  %v261_v22 = vld [vmem:[#allocation7] sm:$0xff]  ;;  %v1019_v34 = vld [vmem:[#allocation3 + $0xa8] sm:$0xff] }
  0x23   :  { %1350 = vst [vmem:[#allocation12_spill] sm:$0xff] %v1001_v52  ;;  %v377_v14 = vmul.f32 %v181_v54, %v1001_v52  ;;  %v184_v38 = vld [vmem:[#allocation5 + $0xa8] sm:$0xff]  ;;  %v1022_v44 = vld [vmem:[#allocation3 + $0x1f0] sm:$0xff]  ;;  %v266_v43 = vld [vmem:[#allocation7 + $0x28] sm:$0xff] }
  0x24   :  { %v466_v7 = vadd.f32 %v465_v59, %v369_v49  ;;  %v221_v49 = vld [vmem:[#allocation5 + $0x1d0] sm:$0xff]  ;;  %v516_v57 = vadd.f32 %v515_v46, %v414_v32  ;;  %v222_v59 = vld [vmem:[#allocation5 + $0x1d8] sm:$0xff]  ;;  %1352 = vst [vmem:[#allocation14_spill] sm:$0xff] %v1010_v9  ;;  %v1027_v54 = vld [vmem:[#allocation3 + $0xb0] sm:$0xff] }
  0x25   :  { %1353 = vst [vmem:[#allocation15_spill] sm:$0xff] %v1019_v34  ;;  %v1032_v5 = vld [vmem:[#allocation3 + $0x1f8] sm:$0xff]  ;;  %v1045_v63 = vld [vmem:[#allocation3 + $0xd0] sm:$0xff] }
  0x26   :  { %v467_v17 = vadd.f32 %v466_v7, %v370_v58  ;;  %v1004_v58 = vld [vmem:[#allocation3 + $0x1d8] sm:$0xff]  ;;  %v517_v7 = vadd.f32 %v516_v57, %v415_v45  ;;  %v225_v45 = vld [vmem:[#allocation5 + $0x1f0] sm:$0xff]  ;;  %1354 = vst [vmem:[#allocation16_spill] sm:$0xff] %v1027_v54 }
  0x27   :  { %v418_v20 = vmul.f32 %v222_v59, %v1004_v58  ;;  %1355 = vst [vmem:[#allocation17_spill] sm:$0xff] %v1032_v5 }
  0x28   :  { %v468_v28 = vadd.f32 %v467_v17, %v371_v6  ;;  %v417_v6 = vmul.f32 %v221_v49, %v998_v48  ;;  %v183_v17 = vld [vmem:[#allocation5 + $0xa0] sm:$0xff]  ;;  %v518_v21 = vadd.f32 %v517_v7, %v416_v55  ;;  %v185_v55 = vld [vmem:[#allocation5 + $0xb0] sm:$0xff]  ;;  %v380_v7 = vmul.f32 %v184_v38, %v1019_v34  ;;  %1358 = vst [vmem:[#allocation20_spill] sm:$0xff] %v1045_v63 }
  0x29   :  { %v379_v46 = vmul.f32 %v183_v17, %v1010_v9  ;;  %v1042_v9 = vld [vmem:[#allocation3 + $0xc8] sm:$0xff]  ;;  %v311_v34 = vld [vmem:[#allocation7 + $0x190] sm:$0xff] }
  0x2a   :  { %v469_v42 = vadd.f32 %v468_v28, %v372_v16  ;;  %v224_v28 = vld [vmem:[#allocation5 + $0x1e8] sm:$0xff]  ;;  %1357 = vst [vmem:[#allocation19_spill] sm:$0xff] %v1042_v9  ;;  %v615_v29 = vmul.f32 %v311_v34, %v953_v37  ;;  %v1065_v37 = vld [vmem:[#allocation3 + $0xe0] sm:$0xff] }
  0x2b   :  { %v1067_v34 = vld [vmem:[#allocation3 + $0x220] sm:$0xff] }
  0x2c   :  { %v470_v51 = vadd.f32 %v469_v42, %v373_v26  ;;  %v1016_v26 = vld [vmem:[#allocation3 + $0x1e8] sm:$0xff]  ;;  %v519_v42 = vadd.f32 %v518_v21, %v417_v6  ;;  %v187_v21 = vld [vmem:[#allocation5 + $0xc0] sm:$0xff] }
  0x2d   :  { %v420_v57 = vmul.f32 %v224_v28, %v1016_v26  ;;  %v226_v6 = vld [vmem:[#allocation5 + $0x1f8] sm:$0xff]  ;;  %v264_v28 = vld [vmem:[#allocation7 + $0x18] sm:$0xff] }
  0x2e   :  { %v471_v62 = vadd.f32 %v470_v51, %v374_v41  ;;  %v419_v41 = vmul.f32 %v223_v12, %v1012_v10  ;;  %v566_v51 = vmul.f32 %v262_v25, %v922_v1  ;;  %v520_v59 = vadd.f32 %v519_v42, %v418_v20  ;;  %v186_v1 = vld [vmem:[#allocation5 + $0xb8] sm:$0xff] }
  0x2f   :  { %v381_v20 = vmul.f32 %v185_v55, %v1027_v54  ;;  %v229_v54 = vld [vmem:[#allocation5 + $0x210] sm:$0xff] }
  0x30   :  { %v472_v16 = vadd.f32 %v471_v62, %v375_v50  ;;  %v565_v50 = vmul.f32 %v261_v22, %v920_v0  ;;  %v1030_v62 = vld [vmem:[#allocation3 + $0xb8] sm:$0xff]  ;;  %v1037_v0 = vld [vmem:[#allocation3 + $0x200] sm:$0xff]  ;;  %v521_v17 = vadd.f32 %v520_v59, %v419_v41  ;;  %v227_v22 = vld [vmem:[#allocation5 + $0x200] sm:$0xff] }
  0x31   :  { %v1049_v41 = vld [vmem:[#allocation3 + $0x210] sm:$0xff]  ;;  %v228_v59 = vld [vmem:[#allocation5 + $0x208] sm:$0xff] }
  0x32   :  { %v473_v32 = vadd.f32 %v472_v16, %v376_v61  ;;  %v263_v61 = vld [vmem:[#allocation7 + $0x10] sm:$0xff]  ;;  %v421_v16 = vmul.f32 %v225_v45, %v1022_v44  ;;  %v663_v42 = vadd.f32 %v566_v51, %v565_v50  ;;  %v522_v38 = vadd.f32 %v521_v17, %v420_v57  ;;  %v1047_v45 = vld [vmem:[#allocation3 + $0x208] sm:$0xff]  ;;  %v312_v57 = vld [vmem:[#allocation7 + $0x198] sm:$0xff] }
  0x33   :  { %v423_v50 = vmul.f32 %v227_v22, %v1037_v0  ;;  %v189_v17 = vld [vmem:[#allocation5 + $0xd0] sm:$0xff] }
  0x34   :  { %v474_v49 = vadd.f32 %v473_v32, %v377_v14  ;;  %v1035_v14 = vld [vmem:[#allocation3 + $0xc0] sm:$0xff]  ;;  %v567_v32 = vmul.f32 %v263_v61, %v924_v2  ;;  %v523_v51 = vadd.f32 %v522_v38, %v421_v16  ;;  %v190_v38 = vld [vmem:[#allocation5 + $0xd8] sm:$0xff] }
  0x35   :  { %1356 = vst [vmem:[#allocation18_spill] sm:$0xff] %v1035_v14  ;;  %v383_v2 = vmul.f32 %v187_v21, %v1035_v14  ;;  %v265_v61 = vld [vmem:[#allocation7 + $0x20] sm:$0xff]  ;;  %v424_v21 = vmul.f32 %v228_v59, %v1047_v45  ;;  %v230_v14 = vld [vmem:[#allocation5 + $0x218] sm:$0xff]  ;;  %v570_v59 = vmul.f32 %v266_v43, %v934_v15  ;;  %v192_v43 = vld [vmem:[#allocation5 + $0xe8] sm:$0xff] }
  0x36   :  { %v475_v12 = vadd.f32 %v474_v49, %v378_v30  ;;  %v422_v30 = vmul.f32 %v226_v6, %v1032_v5  ;;  %v310_v49 = vld [vmem:[#allocation7 + $0x188] sm:$0xff]  ;;  %v568_v6 = vmul.f32 %v264_v28, %v926_v3  ;;  %v313_v22 = vld [vmem:[#allocation7 + $0x1a0] sm:$0xff] }
  0x37   :  { %v614_v5 = vmul.f32 %v310_v49, %v951_v36  ;;  %v616_v36 = vmul.f32 %v312_v57, %v957_v40  ;;  %v314_v49 = vld [vmem:[#allocation7 + $0x1a8] sm:$0xff] }
  0x38   :  { %v476_v25 = vadd.f32 %v475_v12, %v379_v46  ;;  %v382_v46 = vmul.f32 %v186_v1, %v1030_v62  ;;  %v188_v12 = vld [vmem:[#allocation5 + $0xc8] sm:$0xff]  ;;  %v664_v1 = vadd.f32 %v663_v42, %v567_v32  ;;  %v524_v16 = vadd.f32 %v523_v51, %v422_v30  ;;  %v191_v51 = vld [vmem:[#allocation5 + $0xe0] sm:$0xff]  ;;  %v1073_v57 = vld [vmem:[#allocation3 + $0xe8] sm:$0xff] }
  0x39   :  { %v384_v3 = vmul.f32 %v188_v12, %v1042_v9  ;;  %v385_v32 = vmul.f32 %v189_v17, %v1045_v63  ;;  %v425_v42 = vmul.f32 %v229_v54, %v1049_v41  ;;  %v231_v12 = vld [vmem:[#allocation5 + $0x220] sm:$0xff]  ;;  %v717_v40 = vadd.f32 %v615_v29, %v614_v5  ;;  %v1075_v9 = vld [vmem:[#allocation3 + $0x228] sm:$0xff]  ;;  %v232_v63 = vld [vmem:[#allocation5 + $0x228] sm:$0xff] }
  0x3a   :  { %v477_v55 = vadd.f32 %v476_v25, %v380_v7  ;;  %v1057_v7 = vld [vmem:[#allocation3 + $0xd8] sm:$0xff]  ;;  %v525_v30 = vadd.f32 %v524_v16, %v423_v50  ;;  %v315_v16 = vld [vmem:[#allocation7 + $0x1b0] sm:$0xff] }
  0x3b   :  { %v1059_v25 = vld [vmem:[#allocation3 + $0x218] sm:$0xff]  ;;  %v386_v17 = vmul.f32 %v190_v38, %v1057_v7  ;;  %v718_v29 = vadd.f32 %v717_v40, %v616_v36  ;;  %v1081_v5 = vld [vmem:[#allocation3 + $0xf0] sm:$0xff]  ;;  %v317_v40 = vld [vmem:[#allocation7 + $0x1c0] sm:$0xff] }
  0x3c   :  { %v478_v52 = vadd.f32 %v477_v55, %v381_v20  ;;  %v267_v20 = vld [vmem:[#allocation7 + $0x30] sm:$0xff]  ;;  %v569_v55 = vmul.f32 %v265_v61, %v931_v11  ;;  %v617_v11 = vmul.f32 %v313_v22, %v960_v47  ;;  %v665_v61 = vadd.f32 %v664_v1, %v568_v6  ;;  %v316_v38 = vld [vmem:[#allocation7 + $0x1b8] sm:$0xff] }
  0x3d   :  { %v426_v54 = vmul.f32 %v230_v14, %v1059_v25  ;;  %v526_v50 = vadd.f32 %v525_v30, %v424_v21  ;;  %v571_v15 = vmul.f32 %v267_v20, %v937_v19  ;;  %v618_v47 = vmul.f32 %v314_v49, %v968_v56  ;;  %v1083_v1 = vld [vmem:[#allocation3 + $0x230] sm:$0xff]  ;;  %v193_v20 = vld [vmem:[#allocation5 + $0xf0] sm:$0xff]  ;;  %v1089_v49 = vld [vmem:[#allocation3 + $0xf8] sm:$0xff] }
  0x3e   :  { %v479_v28 = vadd.f32 %v478_v52, %v382_v46  ;;  %v268_v46 = vld [vmem:[#allocation7 + $0x38] sm:$0xff]  ;;  %v666_v6 = vadd.f32 %v665_v61, %v569_v55  ;;  %v387_v22 = vmul.f32 %v191_v51, %v1065_v37  ;;  %v427_v14 = vmul.f32 %v231_v12, %v1067_v34  ;;  %v233_v30 = vld [vmem:[#allocation5 + $0x230] sm:$0xff] }
  0x3f   :  { %v527_v21 = vadd.f32 %v526_v50, %v425_v42  ;;  %v572_v19 = vmul.f32 %v268_v46, %v940_v23  ;;  %v619_v56 = vmul.f32 %v315_v16, %v974_v4  ;;  %v719_v36 = vadd.f32 %v718_v29, %v617_v11  ;;  %v1091_v61 = vld [vmem:[#allocation3 + $0x238] sm:$0xff]  ;;  %v194_v46 = vld [vmem:[#allocation5 + $0xf8] sm:$0xff]  ;;  %v1097_v16 = vld [vmem:[#allocation3 + $0x100] sm:$0xff] }
  0x40   :  { %v480_v52 = vadd.f32 %v479_v28, %v383_v2  ;;  %v269_v28 = vld [vmem:[#allocation7 + $0x40] sm:$0xff]  ;;  %v667_v55 = vadd.f32 %v666_v6, %v570_v59  ;;  %v388_v51 = vmul.f32 %v192_v43, %v1073_v57  ;;  %v428_v12 = vmul.f32 %v232_v63, %v1075_v9  ;;  %v234_v50 = vld [vmem:[#allocation5 + $0x238] sm:$0xff] }
  0x41   :  { %v528_v42 = vadd.f32 %v527_v21, %v426_v54  ;;  %v573_v23 = vmul.f32 %v269_v28, %v943_v27  ;;  %v620_v4 = vmul.f32 %v316_v38, %v980_v13  ;;  %v720_v11 = vadd.f32 %v719_v36, %v618_v47  ;;  %v1099_v6 = vld [vmem:[#allocation3 + $0x240] sm:$0xff]  ;;  %v318_v29 = vld [vmem:[#allocation7 + $0x1c8] sm:$0xff]  ;;  %v195_v28 = vld [vmem:[#allocation5 + $0x100] sm:$0xff] }
  0x42   :  { %v481_v2 = vadd.f32 %v480_v52, %v384_v3  ;;  %v270_v52 = vld [vmem:[#allocation7 + $0x48] sm:$0xff]  ;;  %v668_v59 = vadd.f32 %v667_v55, %v571_v15  ;;  %v389_v43 = vmul.f32 %v193_v20, %v1081_v5  ;;  %v429_v63 = vmul.f32 %v233_v30, %v1083_v1  ;;  %v235_v21 = vld [vmem:[#allocation5 + $0x240] sm:$0xff] }
  0x43   :  { %v529_v54 = vadd.f32 %v528_v42, %v427_v14  ;;  %v574_v27 = vmul.f32 %v270_v52, %v946_v31  ;;  %v621_v13 = vmul.f32 %v317_v40, %v986_v24  ;;  %v721_v47 = vadd.f32 %v720_v11, %v619_v56  ;;  %v1105_v38 = vld [vmem:[#allocation3 + $0x108] sm:$0xff]  ;;  %v319_v36 = vld [vmem:[#allocation7 + $0x1d0] sm:$0xff]  ;;  %v196_v52 = vld [vmem:[#allocation5 + $0x108] sm:$0xff] }
  0x44   :  { %v482_v3 = vadd.f32 %v481_v2, %v385_v32  ;;  %v271_v2 = vld [vmem:[#allocation7 + $0x50] sm:$0xff]  ;;  %v669_v15 = vadd.f32 %v668_v59, %v572_v19  ;;  %v1107_v55 = vld [vmem:[#allocation3 + $0x248] sm:$0xff]  ;;  %v390_v20 = vmul.f32 %v194_v46, %v1089_v49  ;;  %v430_v30 = vmul.f32 %v234_v50, %v1091_v61  ;;  %v236_v42 = vld [vmem:[#allocation5 + $0x248] sm:$0xff] }
  0x45   :  { %v530_v14 = vadd.f32 %v529_v54, %v428_v12  ;;  %v575_v31 = vmul.f32 %v271_v2, %v948_v33  ;;  %v622_v24 = vmul.f32 %v318_v29, %v992_v35  ;;  %v722_v56 = vadd.f32 %v721_v47, %v620_v4  ;;  %v1113_v40 = vld [vmem:[#allocation3 + $0x110] sm:$0xff]  ;;  %v320_v11 = vld [vmem:[#allocation7 + $0x1d8] sm:$0xff]  ;;  %v197_v2 = vld [vmem:[#allocation5 + $0x110] sm:$0xff] }
  0x46   :  { %v483_v32 = vadd.f32 %v482_v3, %v386_v17  ;;  %v272_v3 = vld [vmem:[#allocation7 + $0x58] sm:$0xff]  ;;  %v670_v19 = vadd.f32 %v669_v15, %v573_v23  ;;  %v1115_v59 = vld [vmem:[#allocation3 + $0x250] sm:$0xff]  ;;  %v391_v46 = vmul.f32 %v195_v28, %v1097_v16  ;;  %v431_v50 = vmul.f32 %v235_v21, %v1099_v6  ;;  %v237_v54 = vld [vmem:[#allocation5 + $0x250] sm:$0xff] }
  0x47   :  { %v531_v12 = vadd.f32 %v530_v14, %v429_v63  ;;  %v576_v33 = vmul.f32 %v272_v3, %v955_v39  ;;  %v623_v35 = vmul.f32 %v319_v36, %v998_v48  ;;  %v723_v4 = vadd.f32 %v722_v56, %v621_v13  ;;  %v1121_v29 = vld [vmem:[#allocation3 + $0x118] sm:$0xff]  ;;  %v321_v47 = vld [vmem:[#allocation7 + $0x1e0] sm:$0xff]  ;;  %v198_v3 = vld [vmem:[#allocation5 + $0x118] sm:$0xff] }
  0x48   :  { %v484_v17 = vadd.f32 %v483_v32, %v387_v22  ;;  %v273_v32 = vld [vmem:[#allocation7 + $0x60] sm:$0xff]  ;;  %v671_v23 = vadd.f32 %v670_v19, %v574_v27  ;;  %1359 = vst [vmem:[#allocation21_spill] sm:$0xff] %v1121_v29  ;;  %v1123_v15 = vld [vmem:[#allocation3 + $0x258] sm:$0xff]  ;;  %v392_v28 = vmul.f32 %v196_v52, %v1105_v38  ;;  %v432_v21 = vmul.f32 %v236_v42, %v1107_v55  ;;  %v238_v14 = vld [vmem:[#allocation5 + $0x258] sm:$0xff] }
  0x49   :  { %v532_v63 = vadd.f32 %v531_v12, %v430_v30  ;;  %v577_v39 = vmul.f32 %v273_v32, %v965_v53  ;;  %v624_v48 = vmul.f32 %v320_v11, %v1004_v58  ;;  %v724_v13 = vadd.f32 %v723_v4, %v622_v24  ;;  %v1129_v36 = vld [vmem:[#allocation3 + $0x120] sm:$0xff]  ;;  %v322_v56 = vld [vmem:[#allocation7 + $0x1e8] sm:$0xff]  ;;  %v199_v32 = vld [vmem:[#allocation5 + $0x120] sm:$0xff] }
  0x4a   :  { %v485_v22 = vadd.f32 %v484_v17, %v388_v51  ;;  %v274_v17 = vld [vmem:[#allocation7 + $0x68] sm:$0xff]  ;;  %v672_v27 = vadd.f32 %v671_v23, %v575_v31  ;;  %1360 = vst [vmem:[#allocation22_spill] sm:$0xff] %v1129_v36  ;;  %v1131_v19 = vld [vmem:[#allocation3 + $0x260] sm:$0xff]  ;;  %v393_v52 = vmul.f32 %v197_v2, %v1113_v40  ;;  %v433_v42 = vmul.f32 %v237_v54, %v1115_v59  ;;  %v239_v12 = vld [vmem:[#allocation5 + $0x260] sm:$0xff] }
  0x4b   :  { %v533_v30 = vadd.f32 %v532_v63, %v431_v50  ;;  %v578_v53 = vmul.f32 %v274_v17, %v971_v60  ;;  %v625_v58 = vmul.f32 %v321_v47, %v1012_v10  ;;  %v725_v24 = vadd.f32 %v724_v13, %v623_v35  ;;  %v1137_v11 = vld [vmem:[#allocation3 + $0x128] sm:$0xff]  ;;  %v323_v4 = vld [vmem:[#allocation7 + $0x1f0] sm:$0xff]  ;;  %v200_v17 = vld [vmem:[#allocation5 + $0x128] sm:$0xff] }
  0x4c   :  { %v486_v51 = vadd.f32 %v485_v22, %v389_v43  ;;  %v275_v22 = vld [vmem:[#allocation7 + $0x70] sm:$0xff]  ;;  %v673_v31 = vadd.f32 %v672_v27, %v576_v33  ;;  %1361 = vst [vmem:[#allocation23_spill] sm:$0xff] %v1137_v11  ;;  %v1139_v23 = vld [vmem:[#allocation3 + $0x268] sm:$0xff]  ;;  %v394_v2 = vmul.f32 %v198_v3, %v1121_v29  ;;  %v434_v54 = vmul.f32 %v238_v14, %v1123_v15  ;;  %v240_v63 = vld [vmem:[#allocation5 + $0x268] sm:$0xff] }
  0x4d   :  { %v534_v50 = vadd.f32 %v533_v30, %v432_v21  ;;  %v579_v60 = vmul.f32 %v275_v22, %v977_v8  ;;  %v626_v10 = vmul.f32 %v322_v56, %v1016_v26  ;;  %v726_v35 = vadd.f32 %v725_v24, %v624_v48  ;;  %v1145_v47 = vld [vmem:[#allocation3 + $0x130] sm:$0xff]  ;;  %v324_v13 = vld [vmem:[#allocation7 + $0x1f8] sm:$0xff]  ;;  %v201_v22 = vld [vmem:[#allocation5 + $0x130] sm:$0xff] }
  0x4e   :  { %v487_v43 = vadd.f32 %v486_v51, %v390_v20  ;;  %v276_v51 = vld [vmem:[#allocation7 + $0x78] sm:$0xff]  ;;  %v674_v33 = vadd.f32 %v673_v31, %v577_v39  ;;  %1362 = vst [vmem:[#allocation24_spill] sm:$0xff] %v1145_v47  ;;  %v1147_v27 = vld [vmem:[#allocation3 + $0x270] sm:$0xff]  ;;  %v395_v3 = vmul.f32 %v199_v32, %v1129_v36  ;;  %v435_v14 = vmul.f32 %v239_v12, %v1131_v19  ;;  %v241_v30 = vld [vmem:[#allocation5 + $0x270] sm:$0xff] }
  0x4f   :  { %v535_v21 = vadd.f32 %v534_v50, %v433_v42  ;;  %v580_v8 = vmul.f32 %v276_v51, %v983_v18  ;;  %v627_v26 = vmul.f32 %v323_v4, %v1022_v44  ;;  %v727_v48 = vadd.f32 %v726_v35, %v625_v58  ;;  %v1153_v56 = vld [vmem:[#allocation3 + $0x138] sm:$0xff]  ;;  %v325_v24 = vld [vmem:[#allocation7 + $0x200] sm:$0xff]  ;;  %v1364_v50 = vld [vmem:[#allocation10_spill] sm:$0xff] }
  0x50   :  { %v488_v20 = vadd.f32 %v487_v43, %v391_v46  ;;  %v277_v43 = vld [vmem:[#allocation7 + $0x80] sm:$0xff]  ;;  %v675_v39 = vadd.f32 %v674_v33, %v578_v53  ;;  %1363 = vst [vmem:[#allocation25_spill] sm:$0xff] %v1153_v56  ;;  %v1155_v31 = vld [vmem:[#allocation3 + $0x278] sm:$0xff]  ;;  %v396_v32 = vmul.f32 %v200_v17, %v1137_v11  ;;  %v436_v12 = vmul.f32 %v240_v63, %v1139_v23  ;;  %v202_v51 = vld [vmem:[#allocation5 + $0x138] sm:$0xff] }
  0x51   :  { %v536_v42 = vadd.f32 %v535_v21, %v434_v54  ;;  %v581_v18 = vmul.f32 %v277_v43, %v1364_v50  ;;  %v242_v36 = vld [vmem:[#allocation5 + $0x278] sm:$0xff]  ;;  %v728_v58 = vadd.f32 %v727_v48, %v626_v10  ;;  %v1161_v4 = vld [vmem:[#allocation3 + $0x140] sm:$0xff]  ;;  %v397_v17 = vmul.f32 %v201_v22, %v1145_v47  ;;  %v1367_v21 = vld [vmem:[#allocation11_spill] sm:$0xff] }
  0x52   :  { %v489_v46 = vadd.f32 %v488_v20, %v392_v28  ;;  %v278_v20 = vld [vmem:[#allocation7 + $0x88] sm:$0xff]  ;;  %v676_v53 = vadd.f32 %v675_v39, %v579_v60  ;;  %1366 = vst [vmem:[#allocation10_spill] sm:$0xff] %v1161_v4  ;;  %v1163_v33 = vld [vmem:[#allocation3 + $0x280] sm:$0xff]  ;;  %v437_v63 = vmul.f32 %v241_v30, %v1147_v27  ;;  %v203_v50 = vld [vmem:[#allocation5 + $0x140] sm:$0xff]  ;;  %v398_v22 = vmul.f32 %v202_v51, %v1153_v56 }
  0x53   :  { %v1365_v29 = vld [vmem:[#allocation17_spill] sm:$0xff]  ;;  %v537_v54 = vadd.f32 %v536_v42, %v435_v14  ;;  %v582_v43 = vmul.f32 %v278_v20, %v1367_v21  ;;  %v243_v11 = vld [vmem:[#allocation5 + $0x280] sm:$0xff]  ;;  %v729_v10 = vadd.f32 %v728_v58, %v627_v26  ;;  %v438_v30 = vmul.f32 %v242_v36, %v1155_v31  ;;  %v1369_v42 = vld [vmem:[#allocation12_spill] sm:$0xff] }
  0x54   :  { %v490_v28 = vadd.f32 %v489_v46, %v393_v52  ;;  %v279_v46 = vld [vmem:[#allocation7 + $0x90] sm:$0xff]  ;;  %v628_v44 = vmul.f32 %v324_v13, %v1365_v29  ;;  %v326_v35 = vld [vmem:[#allocation7 + $0x208] sm:$0xff]  ;;  %v629_v29 = vmul.f32 %v325_v24, %v1037_v0  ;;  %v677_v60 = vadd.f32 %v676_v53, %v580_v8  ;;  %v204_v21 = vld [vmem:[#allocation5 + $0x148] sm:$0xff] }
  0x55   :  { %v1169_v13 = vld [vmem:[#allocation3 + $0x148] sm:$0xff]  ;;  %v538_v14 = vadd.f32 %v537_v54, %v436_v12  ;;  %v327_v48 = vld [vmem:[#allocation7 + $0x210] sm:$0xff]  ;;  %v583_v20 = vmul.f32 %v279_v46, %v1369_v42  ;;  %v244_v47 = vld [vmem:[#allocation5 + $0x288] sm:$0xff]  ;;  %v630_v0 = vmul.f32 %v326_v35, %v1047_v45  ;;  %v399_v51 = vmul.f32 %v203_v50, %v1161_v4 }
  0x56   :  { %v491_v52 = vadd.f32 %v490_v28, %v394_v2  ;;  %v280_v28 = vld [vmem:[#allocation7 + $0x98] sm:$0xff]  ;;  %1368 = vst [vmem:[#allocation17_spill] sm:$0xff] %v1169_v13  ;;  %v1171_v39 = vld [vmem:[#allocation3 + $0x288] sm:$0xff]  ;;  %v678_v8 = vadd.f32 %v677_v60, %v581_v18  ;;  %v730_v26 = vadd.f32 %v729_v10, %v628_v44  ;;  %v1177_v24 = vld [vmem:[#allocation3 + $0x150] sm:$0xff]  ;;  %v439_v36 = vmul.f32 %v243_v11, %v1163_v33 }
  0x57   :  { %1370 = vst [vmem:[#allocation11_spill] sm:$0xff] %v1177_v24  ;;  %v1179_v53 = vld [vmem:[#allocation3 + $0x290] sm:$0xff]  ;;  %v539_v12 = vadd.f32 %v538_v14, %v437_v63  ;;  %v328_v58 = vld [vmem:[#allocation7 + $0x218] sm:$0xff]  ;;  %v1371_v54 = vld [vmem:[#allocation13_spill] sm:$0xff]  ;;  %v631_v45 = vmul.f32 %v327_v48, %v1049_v41  ;;  %v400_v50 = vmul.f32 %v204_v21, %v1169_v13  ;;  %v440_v11 = vmul.f32 %v244_v47, %v1171_v39 }
  0x58   :  { %v492_v2 = vadd.f32 %v491_v52, %v395_v3  ;;  %v281_v52 = vld [vmem:[#allocation7 + $0xa0] sm:$0xff]  ;;  %v584_v46 = vmul.f32 %v280_v28, %v1371_v54  ;;  %v679_v18 = vadd.f32 %v678_v8, %v582_v43  ;;  %v731_v44 = vadd.f32 %v730_v26, %v629_v29  ;;  %v1185_v35 = vld [vmem:[#allocation3 + $0x158] sm:$0xff]  ;;  %v1373_v14 = vld [vmem:[#allocation14_spill] sm:$0xff] }
  0x59   :  { %v205_v42 = vld [vmem:[#allocation5 + $0x150] sm:$0xff]  ;;  %1372 = vst [vmem:[#allocation12_spill] sm:$0xff] %v1185_v35  ;;  %v1187_v60 = vld [vmem:[#allocation3 + $0x298] sm:$0xff]  ;;  %v540_v63 = vadd.f32 %v539_v12, %v438_v30  ;;  %v585_v28 = vmul.f32 %v281_v52, %v1373_v14  ;;  %v206_v54 = vld [vmem:[#allocation5 + $0x158] sm:$0xff]  ;;  %v632_v41 = vmul.f32 %v328_v58, %v1059_v25 }
  0x5a   :  { %v493_v3 = vadd.f32 %v492_v2, %v396_v32  ;;  %v245_v56 = vld [vmem:[#allocation5 + $0x290] sm:$0xff]  ;;  %v282_v2 = vld [vmem:[#allocation7 + $0xa8] sm:$0xff]  ;;  %v680_v43 = vadd.f32 %v679_v18, %v583_v20  ;;  %v732_v29 = vadd.f32 %v731_v44, %v630_v0  ;;  %v401_v21 = vmul.f32 %v205_v42, %v1177_v24  ;;  %v283_v26 = vld [vmem:[#allocation7 + $0xb0] sm:$0xff] }
  0x5b   :  { %v329_v10 = vld [vmem:[#allocation7 + $0x220] sm:$0xff]  ;;  %v246_v4 = vld [vmem:[#allocation5 + $0x298] sm:$0xff]  ;;  %v441_v47 = vmul.f32 %v245_v56, %v1179_v53  ;;  %v541_v30 = vadd.f32 %v540_v63, %v439_v36  ;;  %v1375_v12 = vld [vmem:[#allocation15_spill] sm:$0xff]  ;;  %v402_v42 = vmul.f32 %v206_v54, %v1185_v35 }
  0x5c   :  { %v494_v32 = vadd.f32 %v493_v3, %v397_v17  ;;  %v330_v3 = vld [vmem:[#allocation7 + $0x228] sm:$0xff]  ;;  %v1193_v48 = vld [vmem:[#allocation3 + $0x160] sm:$0xff]  ;;  %v586_v52 = vmul.f32 %v282_v2, %v1375_v12  ;;  %v207_v14 = vld [vmem:[#allocation5 + $0x160] sm:$0xff]  ;;  %v633_v25 = vmul.f32 %v329_v10, %v1067_v34  ;;  %v681_v20 = vadd.f32 %v680_v43, %v584_v46 }
  0x5d   :  { %1374 = vst [vmem:[#allocation13_spill] sm:$0xff] %v1193_v48  ;;  %v1195_v8 = vld [vmem:[#allocation3 + $0x2a0] sm:$0xff]  ;;  %v247_v13 = vld [vmem:[#allocation5 + $0x2a0] sm:$0xff]  ;;  %v733_v0 = vadd.f32 %v732_v29, %v631_v45  ;;  %v1201_v58 = vld [vmem:[#allocation3 + $0x168] sm:$0xff]  ;;  %v442_v56 = vmul.f32 %v246_v4, %v1187_v60  ;;  %v542_v36 = vadd.f32 %v541_v30, %v440_v11  ;;  %v634_v2 = vmul.f32 %v330_v3, %v1075_v9 }
  0x5e   :  { %v495_v17 = vadd.f32 %v494_v32, %v398_v22  ;;  %v331_v32 = vld [vmem:[#allocation7 + $0x230] sm:$0xff]  ;;  %v1203_v18 = vld [vmem:[#allocation3 + $0x2a8] sm:$0xff]  ;;  %v284_v44 = vld [vmem:[#allocation7 + $0xb8] sm:$0xff]  ;;  %v682_v46 = vadd.f32 %v681_v20, %v585_v28  ;;  %v403_v54 = vmul.f32 %v207_v14, %v1193_v48  ;;  %v443_v4 = vmul.f32 %v247_v13, %v1195_v8 }
  0x5f   :  { %v208_v63 = vld [vmem:[#allocation5 + $0x168] sm:$0xff]  ;;  %v1376_v24 = vld [vmem:[#allocation16_spill] sm:$0xff]  ;;  %v734_v45 = vadd.f32 %v733_v0, %v632_v41  ;;  %v1209_v10 = vld [vmem:[#allocation3 + $0x170] sm:$0xff]  ;;  %v543_v11 = vadd.f32 %v542_v36, %v441_v47  ;;  %v635_v9 = vmul.f32 %v331_v32, %v1083_v1 }
  0x60   :  { %v496_v22 = vadd.f32 %v495_v17, %v399_v51  ;;  %v248_v12 = vld [vmem:[#allocation5 + $0x2a8] sm:$0xff]  ;;  %v587_v34 = vmul.f32 %v283_v26, %v1376_v24  ;;  %v1211_v43 = vld [vmem:[#allocation3 + $0x2b0] sm:$0xff]  ;;  %v285_v29 = vld [vmem:[#allocation7 + $0xc0] sm:$0xff]  ;;  %v588_v24 = vmul.f32 %v284_v44, %v1030_v62  ;;  %v683_v28 = vadd.f32 %v682_v46, %v586_v52 }
  0x61   :  { %v332_v17 = vld [vmem:[#allocation7 + $0x238] sm:$0xff]  ;;  %v209_v3 = vld [vmem:[#allocation5 + $0x170] sm:$0xff]  ;;  %v735_v41 = vadd.f32 %v734_v45, %v633_v25  ;;  %v404_v26 = vmul.f32 %v208_v63, %v1201_v58  ;;  %v444_v20 = vmul.f32 %v248_v12, %v1203_v18  ;;  %v544_v0 = vadd.f32 %v543_v11, %v442_v56  ;;  %v286_v14 = vld [vmem:[#allocation7 + $0xc8] sm:$0xff] }
  0x62   :  { %v497_v51 = vadd.f32 %v496_v22, %v400_v50  ;;  %v249_v30 = vld [vmem:[#allocation5 + $0x2b0] sm:$0xff]  ;;  %v636_v13 = vmul.f32 %v332_v17, %v1091_v61  ;;  %v1220_v47 = vld [vmem:[#allocation3 + $0x2b8] sm:$0xff]  ;;  %v250_v36 = vld [vmem:[#allocation5 + $0x2b8] sm:$0xff]  ;;  %v405_v25 = vmul.f32 %v209_v3, %v1209_v10 }
  0x63   :  { %v333_v22 = vld [vmem:[#allocation7 + $0x240] sm:$0xff]  ;;  %v334_v32 = vld [vmem:[#allocation7 + $0x248] sm:$0xff]  ;;  %v1377_v48 = vld [vmem:[#allocation18_spill] sm:$0xff]  ;;  %v736_v35 = vadd.f32 %v735_v41, %v634_v2  ;;  %v445_v56 = vmul.f32 %v249_v30, %v1211_v43  ;;  %v545_v44 = vadd.f32 %v544_v0, %v443_v4  ;;  %v446_v11 = vmul.f32 %v250_v36, %v1220_v47 }
  0x64   :  { %v498_v50 = vadd.f32 %v497_v51, %v401_v21  ;;  %v589_v21 = vmul.f32 %v285_v29, %v1377_v48  ;;  %v684_v51 = vadd.f32 %v683_v28, %v587_v34  ;;  %v1223_v62 = vld [vmem:[#allocation3 + $0x178] sm:$0xff]  ;;  %v1225_v52 = vld [vmem:[#allocation3 + $0x2c0] sm:$0xff]  ;;  %v287_v63 = vld [vmem:[#allocation7 + $0xd0] sm:$0xff]  ;;  %v637_v61 = vmul.f32 %v333_v22, %v1099_v6 }
  0x65   :  { %v210_v12 = vld [vmem:[#allocation5 + $0x178] sm:$0xff]  ;;  %v251_v17 = vld [vmem:[#allocation5 + $0x2c0] sm:$0xff]  ;;  %v1378_v45 = vld [vmem:[#allocation19_spill] sm:$0xff]  ;;  %v737_v2 = vadd.f32 %v736_v35, %v635_v9  ;;  %v546_v29 = vadd.f32 %v545_v44, %v444_v20  ;;  %v638_v3 = vmul.f32 %v334_v32, %v1107_v55 }
  0x66   :  { %v499_v1 = vadd.f32 %v498_v50, %v402_v42  ;;  %v335_v46 = vld [vmem:[#allocation7 + $0x250] sm:$0xff]  ;;  %v590_v48 = vmul.f32 %v286_v14, %v1378_v45  ;;  %v685_v34 = vadd.f32 %v684_v51, %v588_v24  ;;  %v288_v50 = vld [vmem:[#allocation7 + $0xd8] sm:$0xff]  ;;  %v1233_v28 = vld [vmem:[#allocation3 + $0x180] sm:$0xff]  ;;  %v406_v9 = vmul.f32 %v210_v12, %v1223_v62 }
  0x67   :  { %v1235_v4 = vld [vmem:[#allocation3 + $0x2c8] sm:$0xff]  ;;  %v252_v30 = vld [vmem:[#allocation5 + $0x2c8] sm:$0xff]  ;;  %v1379_v22 = vld [vmem:[#allocation20_spill] sm:$0xff]  ;;  %v738_v0 = vadd.f32 %v737_v2, %v636_v13  ;;  %v447_v20 = vmul.f32 %v251_v17, %v1225_v52  ;;  %v547_v14 = vadd.f32 %v546_v29, %v445_v56  ;;  %v639_v55 = vmul.f32 %v335_v46, %v1115_v59 }
  0x68   :  { %v500_v42 = vadd.f32 %v499_v1, %v403_v54  ;;  %v591_v41 = vmul.f32 %v287_v63, %v1379_v22  ;;  %v686_v54 = vadd.f32 %v685_v34, %v589_v21  ;;  %v1238_v1 = vld [vmem:[#allocation3 + $0x2d0] sm:$0xff]  ;;  %v253_v35 = vld [vmem:[#allocation5 + $0x2d0] sm:$0xff]  ;;  %v336_v51 = vld [vmem:[#allocation7 + $0x258] sm:$0xff] }
  0x69   :  { %v211_v24 = vld [vmem:[#allocation5 + $0x180] sm:$0xff]  ;;  %v289_v32 = vld [vmem:[#allocation7 + $0xe0] sm:$0xff]  ;;  %v739_v63 = vadd.f32 %v738_v0, %v637_v61  ;;  %v1244_v21 = vld [vmem:[#allocation3 + $0x2d8] sm:$0xff]  ;;  %v548_v45 = vadd.f32 %v547_v14, %v446_v11  ;;  %v449_v56 = vmul.f32 %v253_v35, %v1238_v1 }
  0x6a   :  { %v501_v6 = vadd.f32 %v500_v42, %v404_v26  ;;  %v592_v26 = vmul.f32 %v288_v50, %v1057_v7  ;;  %v687_v44 = vadd.f32 %v686_v54, %v590_v48  ;;  %v1246_v13 = vld [vmem:[#allocation3 + $0x2e0] sm:$0xff]  ;;  %v448_v42 = vmul.f32 %v252_v30, %v1235_v4  ;;  %v254_v12 = vld [vmem:[#allocation5 + $0x2d8] sm:$0xff]  ;;  %v255_v2 = vld [vmem:[#allocation5 + $0x2e0] sm:$0xff] }
  0x6b   :  { %v407_v17 = vmul.f32 %v211_v24, %v1233_v28  ;;  %v290_v59 = vld [vmem:[#allocation7 + $0xe8] sm:$0xff]  ;;  %v740_v34 = vadd.f32 %v739_v63, %v638_v3  ;;  %v549_v48 = vadd.f32 %v548_v45, %v447_v20  ;;  %v291_v61 = vld [vmem:[#allocation7 + $0xf0] sm:$0xff]  ;;  %v593_v50 = vmul.f32 %v289_v32, %v1065_v37  ;;  %v256_v54 = vld [vmem:[#allocation5 + $0x2e8] sm:$0xff] }
  0x6c   :  { %v502_v36 = vadd.f32 %v501_v6, %v405_v25  ;;  %v337_v25 = vld [vmem:[#allocation7 + $0x260] sm:$0xff]  ;;  %v688_v46 = vadd.f32 %v687_v44, %v591_v41  ;;  %v338_v29 = vld [vmem:[#allocation7 + $0x268] sm:$0xff]  ;;  %v640_v6 = vmul.f32 %v336_v51, %v1123_v15  ;;  %v450_v0 = vmul.f32 %v254_v12, %v1244_v21  ;;  %v339_v35 = vld [vmem:[#allocation7 + $0x270] sm:$0xff] }
  0x6d   :  { %v741_v11 = vadd.f32 %v740_v34, %v639_v55  ;;  %v1253_v22 = vld [vmem:[#allocation3 + $0x2e8] sm:$0xff]  ;;  %v550_v24 = vadd.f32 %v549_v48, %v448_v42  ;;  %v594_v3 = vmul.f32 %v290_v59, %v1073_v57  ;;  %v641_v41 = vmul.f32 %v337_v25, %v1131_v19  ;;  %v292_v37 = vld [vmem:[#allocation7 + $0xf8] sm:$0xff]  ;;  %v257_v55 = vld [vmem:[#allocation5 + $0x2f0] sm:$0xff] }
  0x6e   :  { %v503_v7 = vadd.f32 %v502_v36, %v406_v9  ;;  %v689_v30 = vadd.f32 %v688_v46, %v592_v26  ;;  %v1258_v9 = vld [vmem:[#allocation3 + $0x2f0] sm:$0xff]  ;;  %v451_v20 = vmul.f32 %v255_v2, %v1246_v13  ;;  %v595_v15 = vmul.f32 %v291_v61, %v1081_v5  ;;  %v293_v51 = vld [vmem:[#allocation7 + $0x100] sm:$0xff]  ;;  %v340_v26 = vld [vmem:[#allocation7 + $0x278] sm:$0xff] }
  0x6f   :  { %v642_v14 = vmul.f32 %v338_v29, %v1139_v23  ;;  %v551_v32 = vadd.f32 %v550_v24, %v449_v56  ;;  %v742_v63 = vadd.f32 %v741_v11, %v640_v6  ;;  %v452_v57 = vmul.f32 %v256_v54, %v1253_v22  ;;  %v1265_v42 = vld [vmem:[#allocation3 + $0x2f8] sm:$0xff]  ;;  %v258_v45 = vld [vmem:[#allocation5 + $0x2f8] sm:$0xff]  ;;  %v341_v59 = vld [vmem:[#allocation7 + $0x280] sm:$0xff] }
  0x70   :  { %v504_v36 = vadd.f32 %v503_v7, %v407_v17  ;;  %v690_v44 = vadd.f32 %v689_v30, %v593_v50  ;;  %v643_v19 = vmul.f32 %v339_v35, %v1147_v27  ;;  %v596_v5 = vmul.f32 %v292_v37, %v1089_v49  ;;  %v1268_v46 = vld [vmem:[#allocation3 + $0x300] sm:$0xff]  ;;  %v294_v56 = vld [vmem:[#allocation7 + $0x108] sm:$0xff]  ;;  %v259_v7 = vld [vmem:[#allocation5 + $0x300] sm:$0xff] }
  0x71   :  { %v552_v12 = vadd.f32 %v551_v32, %v450_v0  ;;  %v743_v23 = vadd.f32 %v742_v63, %v641_v41  ;;  %v453_v17 = vmul.f32 %v257_v55, %v1258_v9  ;;  %v597_v34 = vmul.f32 %v293_v51, %v1097_v16  ;;  %v295_v61 = vld [vmem:[#allocation7 + $0x110] sm:$0xff]  ;;  %v342_v29 = vld [vmem:[#allocation7 + $0x288] sm:$0xff]  ;;  %v260_v54 = vld [vmem:[#allocation5 + $0x308] sm:$0xff] }
  0x72   :  { %v691_v25 = vadd.f32 %v690_v44, %v594_v3  ;;  %v644_v2 = vmul.f32 %v340_v26, %v1155_v31  ;;  %v505_v27 = vrot.slane %v504_v36, 4  ;;  %v454_v49 = vmul.f32 %v258_v45, %v1265_v42  ;;  %v1275_v11 = vld [vmem:[#allocation3 + $0x308] sm:$0xff]  ;;  %v343_v24 = vld [vmem:[#allocation7 + $0x290] sm:$0xff]  ;;  %v296_v41 = vld [vmem:[#allocation7 + $0x118] sm:$0xff] }
  0x73   :  { %v553_v48 = vadd.f32 %v552_v12, %v451_v20  ;;  %v744_v6 = vadd.f32 %v743_v23, %v642_v14  ;;  %v645_v30 = vmul.f32 %v341_v59, %v1163_v33  ;;  %v598_v16 = vmul.f32 %v294_v56, %v1105_v38  ;;  %v297_v55 = vld [vmem:[#allocation7 + $0x120] sm:$0xff]  ;;  %v344_v33 = vld [vmem:[#allocation7 + $0x298] sm:$0xff]  ;;  %v298_v59 = vld [vmem:[#allocation7 + $0x128] sm:$0xff] }
  0x74   :  { %v692_v50 = vadd.f32 %v691_v25, %v595_v15  ;;  %v455_v3 = vmul.f32 %v259_v7, %v1268_v46  ;;  %v599_v20 = vmul.f32 %v295_v61, %v1113_v40  ;;  %v646_v37 = vmul.f32 %v342_v29, %v1171_v39  ;;  %v345_v63 = vld [vmem:[#allocation7 + $0x2a0] sm:$0xff]  ;;  %v1381_v40 = vld [vmem:[#allocation22_spill] sm:$0xff] }
  0x75   :  { %v554_v0 = vadd.f32 %v553_v48, %v452_v57  ;;  %v745_v31 = vadd.f32 %v744_v6, %v643_v19  ;;  %v506_v15 = vadd.f32 %v505_v27, %v504_v36  ;;  %v456_v26 = vmul.f32 %v260_v54, %v1275_v11  ;;  %v1380_v57 = vld [vmem:[#allocation21_spill] sm:$0xff]  ;;  %v299_v23 = vld [vmem:[#allocation7 + $0x130] sm:$0xff]  ;;  %v1382_v27 = vld [vmem:[#allocation23_spill] sm:$0xff] }
  0x76   :  { %v693_v35 = vadd.f32 %v692_v50, %v596_v5  ;;  %v647_v44 = vmul.f32 %v343_v24, %v1179_v53  ;;  %v600_v19 = vmul.f32 %v296_v41, %v1380_v57  ;;  %v601_v5 = vmul.f32 %v297_v55, %v1381_v40  ;;  %v347_v7 = vld [vmem:[#allocation7 + $0x2b0] sm:$0xff]  ;;  %v300_v50 = vld [vmem:[#allocation7 + $0x138] sm:$0xff]  ;;  %v1383_v6 = vld [vmem:[#allocation24_spill] sm:$0xff] }
  0x77   :  { %v555_v14 = vadd.f32 %v554_v0, %v453_v17  ;;  %v746_v51 = vadd.f32 %v745_v31, %v644_v2  ;;  %v648_v39 = vmul.f32 %v344_v33, %v1187_v60  ;;  %v507_v36 = vrot.slane %v506_v15, 2  ;;  %v346_v17 = vld [vmem:[#allocation7 + $0x2a8] sm:$0xff]  ;;  %v301_v0 = vld [vmem:[#allocation7 + $0x140] sm:$0xff]  ;;  %v348_v24 = vld [vmem:[#allocation7 + $0x2b8] sm:$0xff] }
  0x78   :  { %v694_v32 = vadd.f32 %v693_v35, %v597_v34  ;;  %v649_v2 = vmul.f32 %v345_v63, %v1195_v8  ;;  %v602_v48 = vmul.f32 %v298_v59, %v1382_v27  ;;  %v651_v31 = vmul.f32 %v347_v7, %v1211_v43  ;;  %v1384_v41 = vld [vmem:[#allocation25_spill] sm:$0xff]  ;;  %v1385_v33 = vld [vmem:[#allocation10_spill] sm:$0xff] }
  0x79   :  { %v556_v38 = vadd.f32 %v555_v14, %v454_v49  ;;  %v747_v12 = vadd.f32 %v746_v51, %v645_v30  ;;  %v603_v49 = vmul.f32 %v299_v23, %v1383_v6  ;;  %v650_v30 = vmul.f32 %v346_v17, %v1203_v18  ;;  %v302_v55 = vld [vmem:[#allocation7 + $0x148] sm:$0xff]  ;;  %v352_v17 = vld [vmem:[#allocation7 + $0x2d8] sm:$0xff] }
  0x7a   :  { %v695_v45 = vadd.f32 %v694_v32, %v598_v16  ;;  %v508_v60 = vadd.f32 %v507_v36, %v506_v15  ;;  %v605_v32 = vmul.f32 %v301_v0, %v1385_v33  ;;  %v652_v51 = vmul.f32 %v348_v24, %v1220_v47  ;;  %v307_v24 = vld [vmem:[#allocation7 + $0x170] sm:$0xff]  ;;  %v356_v33 = vld [vmem:[#allocation7 + $0x2f8] sm:$0xff] }
  0x7b   :  { %v557_v25 = vadd.f32 %v556_v38, %v455_v3  ;;  %v748_v34 = vadd.f32 %v747_v12, %v646_v37  ;;  %v349_v3 = vld [vmem:[#allocation7 + $0x2c0] sm:$0xff]  ;;  %v1386_v12 = vld [vmem:[#allocation17_spill] sm:$0xff]  ;;  %v656_v6 = vmul.f32 %v352_v17, %v1244_v21  ;;  %v611_v21 = vmul.f32 %v307_v24, %v1209_v10 }
  0x7c   :  { %v696_v56 = vadd.f32 %v695_v45, %v599_v20  ;;  %v604_v20 = vmul.f32 %v300_v50, %v1384_v41  ;;  %v509_v18 = vrot.slane %v508_v60, 1  ;;  %v653_v57 = vmul.f32 %v349_v3, %v1225_v52  ;;  %v351_v45 = vld [vmem:[#allocation7 + $0x2d0] sm:$0xff]  ;;  %v353_v50 = vld [vmem:[#allocation7 + $0x2e0] sm:$0xff]  ;;  %v308_v3 = vld [vmem:[#allocation7 + $0x178] sm:$0xff] }
  0x7d   :  { %v558_v53 = vadd.f32 %v557_v25, %v456_v26  ;;  %v749_v29 = vadd.f32 %v748_v34, %v647_v44  ;;  %v303_v26 = vld [vmem:[#allocation7 + $0x150] sm:$0xff]  ;;  %v350_v44 = vld [vmem:[#allocation7 + $0x2c8] sm:$0xff]  ;;  %v606_v59 = vmul.f32 %v302_v55, %v1386_v12  ;;  %v655_v7 = vmul.f32 %v351_v45, %v1238_v1  ;;  %v309_v55 = vld [vmem:[#allocation7 + $0x180] sm:$0xff] }
  0x7e   :  { %v697_v61 = vadd.f32 %v696_v56, %v600_v19  ;;  %v304_v19 = vld [vmem:[#allocation7 + $0x158] sm:$0xff]  ;;  %v654_v25 = vmul.f32 %v350_v44, %v1235_v4  ;;  %v510_v47 = vadd.f32 %v509_v18, %v508_v60  ;;  %v355_v41 = vld [vmem:[#allocation7 + $0x2f0] sm:$0xff]  ;;  %v358_v10 = vld [vmem:[#allocation7 + $0x308] sm:$0xff] }
  0x7f   :  { %v559_v54 = vrot.slane %v558_v53, 4  ;;  %v750_v35 = vadd.f32 %v749_v29, %v648_v39  ;;  %v1387_v39 = vld [vmem:[#allocation11_spill] sm:$0xff]  ;;  %v306_v29 = vld [vmem:[#allocation7 + $0x168] sm:$0xff] }
  0x80   :  { %v698_v16 = vadd.f32 %v697_v61, %v601_v5  ;;  %v607_v36 = vmul.f32 %v303_v26, %v1387_v39  ;;  %v610_v1 = vmul.f32 %v306_v29, %v1201_v58  ;;  %v660_v26 = vmul.f32 %v356_v33, %v1265_v42 }
  0x81   :  { %v560_v8 = vadd.f32 %v559_v54, %v558_v53  ;;  %v751_v14 = vadd.f32 %v750_v35, %v649_v2  ;;  %v305_v2 = vld [vmem:[#allocation7 + $0x160] sm:$0xff]  ;;  %v657_v35 = vmul.f32 %v353_v50, %v1246_v13  ;;  %v613_v13 = vmul.f32 %v309_v55, %v1233_v28 }
  0x82   :  { %v699_v37 = vadd.f32 %v698_v16, %v602_v48  ;;  %v1388_v53 = vld [vmem:[#allocation12_spill] sm:$0xff]  ;;  %v354_v16 = vld [vmem:[#allocation7 + $0x2e8] sm:$0xff] }
  0x83   :  { %v561_v15 = vrot.slane %v560_v8, 2  ;;  %v752_v63 = vadd.f32 %v751_v14, %v650_v30  ;;  %v608_v52 = vmul.f32 %v304_v19, %v1388_v53 }
  0x84   :  { %v700_v38 = vadd.f32 %v699_v37, %v603_v49  ;;  %v1389_v49 = vld [vmem:[#allocation13_spill] sm:$0xff] }
  0x85   :  { %v562_v43 = vadd.f32 %v561_v15, %v560_v8  ;;  %v753_v5 = vadd.f32 %v752_v63, %v651_v31  ;;  %v609_v30 = vmul.f32 %v305_v2, %v1389_v49  ;;  %v357_v15 = vld [vmem:[#allocation7 + $0x300] sm:$0xff] }
  0x86   :  { %v701_v40 = vadd.f32 %v700_v38, %v604_v20  ;;  %v658_v20 = vmul.f32 %v354_v16, %v1253_v22  ;;  %v661_v22 = vmul.f32 %v357_v15, %v1268_v46 }
  0x87   :  { %v563_v23 = vrot.slane %v562_v43, 1  ;;  %v754_v34 = vadd.f32 %v753_v5, %v652_v51  ;;  %v659_v51 = vmul.f32 %v355_v41, %v1258_v9 }
  0x88   :  { %v702_v56 = vadd.f32 %v701_v40, %v605_v32  ;;  %v612_v32 = vmul.f32 %v308_v3, %v1223_v62 }
  0x89   :  { %v564_v27 = vadd.f32 %v563_v23, %v562_v43  ;;  %v755_v61 = vadd.f32 %v754_v34, %v653_v57  ;;  %v662_v43 = vmul.f32 %v358_v10, %v1275_v11  ;;  %v788_v34 = vstv %s1322_s0 }
  0x8a   :  { %v703_v48 = vadd.f32 %v702_v56, %v606_v59 }
  0x8b   :  { %v774_v4 = vsel %vm773_vm0, %v564_v27, %v510_v47  ;;  %v756_v54 = vadd.f32 %v755_v61, %v654_v25 }
  0x8c   :  { %v704_v60 = vadd.f32 %v703_v48, %v607_v36  ;;  %v777_v0 = vsel %vm776_vm1, %v774_v4, 0.0 }
  0x8d   :  { %778 = vadd.xlane.f32.xlu0 %v777_v0  ;;  %v757_v8 = vadd.f32 %v756_v54, %v655_v7 }
  0x8e   :  { %v705_v31 = vadd.f32 %v704_v60, %v608_v52 }
  0x8f   :  { %v758_v14 = vadd.f32 %v757_v8, %v656_v6 }
  0x90   :  { %v706_v37 = vadd.f32 %v705_v31, %v609_v30 }
  0x91   :  { %v759_v58 = vadd.f32 %v758_v14, %v657_v35 }
  0x92   :  { %v707_v18 = vadd.f32 %v706_v37, %v610_v1 }
  0x93   :  { %v760_v38 = vadd.f32 %v759_v58, %v658_v20 }
  0x94   :  { %v708_v44 = vadd.f32 %v707_v18, %v611_v21 }
  0x95   :  { %v761_v57 = vadd.f32 %v760_v38, %v659_v51 }
  0x96   :  { %v709_v63 = vadd.f32 %v708_v44, %v612_v32 }
  0x97   :  { %v762_v62 = vadd.f32 %v761_v57, %v660_v26 }
  0x98   :  { %v710_v19 = vadd.f32 %v709_v63, %v613_v13 }
  0x99   :  { %v763_v9 = vadd.f32 %v762_v62, %v661_v22 }
  0x9a   :  { %v711_v45 = vrot.slane %v710_v19, 4 }
  0x9b   :  { %v764_v59 = vadd.f32 %v763_v9, %v662_v43 }
  0x9c   :  { %v712_v12 = vadd.f32 %v711_v45, %v710_v19 }
  0x9d   :  { %v765_v5 = vrot.slane %v764_v59, 4 }
  0x9e   :  { %v713_v40 = vrot.slane %v712_v12, 2 }
  0x9f   :  { %v766_v39 = vadd.f32 %v765_v5, %v764_v59 }
  0xa0   :  { %v714_v28 = vadd.f32 %v713_v40, %v712_v12 }
  0xa1   :  { %v767_v36 = vrot.slane %v766_v39, 2 }
  0xa2   :  { %v715_v42 = vrot.slane %v714_v28, 1 }
  0xa3   :  { %v768_v25 = vadd.f32 %v767_v36, %v766_v39 }
  0xa4   :  { %v716_v47 = vadd.f32 %v715_v42, %v714_v28 }
  0xa5   :  { %v769_v23 = vrot.slane %v768_v25, 1 }
  0xa7   :  { %v770_v46 = vadd.f32 %v769_v23, %v768_v25 }
  0xa9   :  { %v782_v17 = vsel %vm773_vm0, %v770_v46, %v716_v47 }
  0xaa   :  { %v784_v11 = vsel %vm776_vm1, %v782_v17, 0.0 }
  0xab   :  { %785 = vadd.xlane.f32.xlu0 %v784_v11 }
 0x100   :  { %v779_v56 = vpop.xlane.xlu0 %778 }
 0x101   :  { %v789_v2 = vmin.f32 %v779_v56, %v788_v34 }
 0x103   :  { %v790_v53 = vsub.f32 0.0, %v789_v2 }
 0x11e   :  { %v786_v52 = vpop.xlane.xlu0 %785 }
 0x11f   :  { %v791_v7 = vadd.f32 %v790_v53, %v786_v52 }
 0x121   :  { %793 = vst.msk [vmem:[%s1326_s4] sm:$0x3] %vm792_vm2, %v791_v7 }
 0x122   :  { %798 = vsyncpa [#allocation4], 1 }
 0x123   :  { %799 = vsyncpa [#allocation6], 1 }

</bundles_post_ra>
